<compile_context>
chip_gen: v6e
topology: v6e:2x2x1
jax: 0.10.0
libtpu: 0.0.40
codegen_flags: <defaults>
</compile_context>

<pallas_src>
import functools

import jax
import jax.numpy as jnp
from jax import lax
from jax.experimental import pallas as pl
from jax.experimental.pallas import tpu as pltpu


# ----------------------------------------------------------------------------- kernel

def _agent_kernel(x_ref, w1_ref, b1_ref, a1_ref,
                  w2_ref, b2_ref, a2_ref,
                  w3t_ref, b3_ref, o_ref, *, compute_dtype):
    f32 = jnp.float32

    # Batch-major tile straight from HBM: (tb, obs).
    x = x_ref[...].astype(f32)

    # F.normalize(x, dim=1): x / max(||x||, 1e-12) == x * min(rsqrt(ss), 1e12).
    ss = jnp.sum(x * x, axis=1, keepdims=True)                     # (tb, 1)
    inv = jnp.minimum(lax.rsqrt(ss), 1e12)
    xn = (x * inv).astype(compute_dtype)

    a1 = a1_ref[0, 0]                                              # f32 SMEM scalars
    a2 = a2_ref[0, 0]

    # Layer 1:  W1 @ xn^T  (NT matmul -> (hidden, tb); batch owns the lane axis)
    z = lax.dot_general(w1_ref[...], xn, (((1,), (1,)), ((), ())),
                        preferred_element_type=f32) + b1_ref[...]
    h = jnp.where(z >= 0.0, z, a1 * z).astype(compute_dtype)       # PReLU, lane-dense

    # Layer 2:  W2 @ h  (NN matmul -> (hidden, tb))
    z = lax.dot_general(w2_ref[...], h, (((1,), (0,)), ((), ())),
                        preferred_element_type=f32) + b2_ref[...]
    h = jnp.where(z >= 0.0, z, a2 * z).astype(compute_dtype)

    # Layer 3:  h^T @ W3^T  (TN matmul -> batch-major (tb, action); w3 is passed
    # pre-transposed as (hidden, action) so no explicit transpose op is needed)
    out = lax.dot_general(h, w3t_ref[...], (((0,), (0,)), ((), ())),
                          preferred_element_type=f32) + b3_ref[...]
    o_ref[...] = out.astype(o_ref.dtype)


# ----------------------------------------------------------------------------- wrapper

def _round_up(n, m):
    return ((n + m - 1) // m) * m


def _vmem_estimate_bytes(tb, obs, hidden, action):
    """Conservative lane-padded VMEM footprint of one grid step (bytes)."""
    lane = lambda n: _round_up(max(int(n), 1), 128)
    sub = lambda n: _round_up(max(int(n), 1), 8)
    # double-buffered x / out pipeline blocks (last dim padded to 128 lanes)
    blocks = 2 * 4 * tb * (lane(obs) + lane(action))
    # resident weights / biases (also double-buffered; tiny)
    weights = 2 * 4 * (sub(hidden) * (lane(obs) + lane(hidden) + 2 * lane(1) + lane(action))
                       + sub(1) * lane(action))
    # rough in-kernel temporaries: f32 x copy + normalized copy (lane padded),
    # staged x^T for the MXU, h1/h2 feature-major, pre-store out
    temps = 4 * tb * (2 * lane(obs) + obs + 4 * hidden + lane(action))
    return blocks + weights + temps


def agent_forward(x, params, *, batch_tile=8192, compute_dtype=jnp.float32):
    """x: (B, obs). params: w* stored (out, in), b* stored (out,), a* scalar."""
    B, obs = x.shape
    hidden = params["w1"].shape[0]
    action = params["w3"].shape[0]

    # ---- batch-tile selection --------------------------------------------------
    if B <= batch_tile:
        tb = B
        if B >= 2048:                                   # >=2 grid steps (v7x: both TCs)
            tb = _round_up(pl.cdiv(B, 2), 8)
    else:
        tb = max(8, (batch_tile // 8) * 8)              # multi-tile => multiple of 8

    VMEM_BUDGET = 40 * 1024 * 1024                      # fits v5e/v6e/v7x physical VMEM
    while tb > 1024 and _vmem_estimate_bytes(tb, obs, hidden, action) > VMEM_BUDGET:
        tb = _round_up(tb // 2, 8)

    grid = (pl.cdiv(B, tb),)                            # ragged last tile is clamped
    est = _vmem_estimate_bytes(tb, obs, hidden, action)
    vmem_limit = int(min(48 * 1024 * 1024, max(16 * 1024 * 1024, est + (4 << 20))))

    # ---- parameter plumbing (tiny arrays; negligible cost) ----------------------
    cd = compute_dtype
    w1 = params["w1"].astype(cd)                        # (hidden, obs)
    w2 = params["w2"].astype(cd)                        # (hidden, hidden)
    w3t = params["w3"].T.astype(cd)                     # (hidden, action)  pre-transposed
    b1 = params["b1"].reshape(hidden, 1).astype(jnp.float32)
    b2 = params["b2"].reshape(hidden, 1).astype(jnp.float32)
    b3 = params["b3"].reshape(1, action).astype(jnp.float32)
    a1 = params["a1"].reshape(1, 1).astype(jnp.float32)
    a2 = params["a2"].reshape(1, 1).astype(jnp.float32)

    vmem = pltpu.MemorySpace.VMEM
    smem = pltpu.MemorySpace.SMEM

    def resident(shape):
        # Constant block index => stays VMEM-resident across all grid steps.
        return pl.BlockSpec(shape, lambda i: (0, 0), memory_space=vmem)

    in_specs = [
        pl.BlockSpec((tb, obs), lambda i: (i, 0), memory_space=vmem),   # x tile
        resident((hidden, obs)),                                        # w1
        resident((hidden, 1)),                                          # b1
        pl.BlockSpec(memory_space=smem),                                # a1 scalar
        resident((hidden, hidden)),                                     # w2
        resident((hidden, 1)),                                          # b2
        pl.BlockSpec(memory_space=smem),                                # a2 scalar
        resident((hidden, action)),                                     # w3^T
        resident((1, action)),                                          # b3
    ]
    out_specs = pl.BlockSpec((tb, action), lambda i: (i, 0), memory_space=vmem)

    flops = 2 * B * (obs * hidden + hidden * hidden + hidden * action) + 6 * B * obs
    bytes_accessed = (x.dtype.itemsize * B * obs + 4 * B * action
                      + 4 * (hidden * obs + hidden * hidden + hidden * action
                             + 2 * hidden + action + 2))

    kernel = functools.partial(_agent_kernel, compute_dtype=cd)

    out = pl.pallas_call(
        kernel,
        out_shape=jax.ShapeDtypeStruct((B, action), jnp.float32),
        grid=grid,
        in_specs=in_specs,
        out_specs=out_specs,
        compiler_params=pltpu.CompilerParams(
            dimension_semantics=("parallel",),
            vmem_limit_bytes=vmem_limit),
        cost_estimate=pl.CostEstimate(
            flops=flops, transcendentals=B, bytes_accessed=bytes_accessed),
    )(x, w1, b1, a1, w2, b2, a2, w3t, b3)

    return out                                           # (B, action), no extra HBM pass


# ----------------------------------------------------------------------------- params / reference

def init_params(key, obs_size, action_size, hidden_size):
    """Deterministic synthetic init (uniform fan-in, like torch Linear defaults)."""
    ks = jax.random.split(key, 6)

    def lin(kw, kb, fan_in, fan_out):
        bound = 1.0 / (fan_in ** 0.5)
        w = jax.random.uniform(kw, (fan_out, fan_in), jnp.float32, -bound, bound)
        b = jax.random.uniform(kb, (fan_out,), jnp.float32, -bound, bound)
        return w, b

    w1, b1 = lin(ks[0], ks[1], obs_size, hidden_size)
    w2, b2 = lin(ks[2], ks[3], hidden_size, hidden_size)
    w3, b3 = lin(ks[4], ks[5], hidden_size, action_size)
    # PReLU default: single parameter initialized to 0.25
    a1 = jnp.full((), 0.25, jnp.float32)
    a2 = jnp.full((), 0.25, jnp.float32)
    return dict(w1=w1, b1=b1, a1=a1, w2=w2, b2=b2, a2=a2, w3=w3, b3=b3)


def agent_reference(x, p):
    """Plain-JAX reference (batch-major) for correctness checks."""
    x = x.astype(jnp.float32)
    norm = jnp.maximum(jnp.sqrt(jnp.sum(x * x, axis=1, keepdims=True)), 1e-12)
    x = x / norm
    h = x @ p["w1"].T + p["b1"]
    h = jnp.where(h >= 0, h, p["a1"] * h)
    h = h @ p["w2"].T + p["b2"]
    h = jnp.where(h >= 0, h, p["a2"] * h)
    return h @ p["w3"].T + p["b3"]


# ----------------------------------------------------------------------------- main

if __name__ == "__main__":
    obs_size, action_size, hidden_size = 16, 4, 32

    key = jax.random.PRNGKey(0)
    kp, k1, k2, k3 = jax.random.split(key, 4)
    params = init_params(kp, obs_size, action_size, hidden_size)

    # 1) Tiny batch: single full-dim tile, grid=(1,).
    x1 = jax.random.normal(k1, (8, obs_size), jnp.float32)
    o1 = jax.block_until_ready(agent_forward(x1, params))
    r1 = agent_reference(x1, params)
    assert o1.shape == (8, action_size)
    assert jnp.allclose(o1, r1, atol=1e-4, rtol=1e-4), "mismatch (B=8)"

    # 2) Multi-tile, evenly divisible batch (exercises resident-weight pipelining).
    x2 = jax.random.normal(k2, (384, obs_size), jnp.float32)
    o2 = jax.block_until_ready(agent_forward(x2, params, batch_tile=128))
    r2 = agent_reference(x2, params)
    assert o2.shape == (384, action_size)
    assert jnp.allclose(o2, r2, atol=1e-4, rtol=1e-4), "mismatch (B=384)"

    # 3) Ragged last tile (no padding pass; boundary block clamped by the pipeline).
    x3 = jax.random.normal(k3, (200, obs_size), jnp.float32)
    o3 = jax.block_until_ready(agent_forward(x3, params, batch_tile=128))
    r3 = agent_reference(x3, params)
    assert o3.shape == (200, action_size)
    assert jnp.allclose(o3, r3, atol=1e-4, rtol=1e-4), "mismatch (B=200, ragged)"

    # 4) bf16 MXU-input path (recommended on v6e/v7x); f32 accumulation.
    o4 = jax.block_until_ready(
        agent_forward(x2, params, batch_tile=128, compute_dtype=jnp.bfloat16))
    assert jnp.allclose(o4, r2, atol=5e-2, rtol=5e-2), "mismatch (bf16 path)"

    print("KERNEL_OK")
</pallas_src>

<mosaic_0001>
module attributes {stable_mosaic.version = 11 : i64} {
  func.func @_agent_kernel(%arg0: i32, %arg1: memref<8x16xf32, #tpu.memory_space<vmem>>, %arg2: memref<32x16xf32, #tpu.memory_space<vmem>>, %arg3: memref<32x1xf32, #tpu.memory_space<vmem>>, %arg4: memref<1x1xf32, #tpu.memory_space<smem>>, %arg5: memref<32x32xf32, #tpu.memory_space<vmem>>, %arg6: memref<32x1xf32, #tpu.memory_space<vmem>>, %arg7: memref<1x1xf32, #tpu.memory_space<smem>>, %arg8: memref<32x4xf32, #tpu.memory_space<vmem>>, %arg9: memref<1x4xf32, #tpu.memory_space<vmem>>, %arg10: memref<8x4xf32, #tpu.memory_space<vmem>>) attributes {dimension_semantics = [#tpu.dimension_semantics<parallel>], iteration_bounds = array<i64: 1>, scalar_prefetch = 0 : i64, scratch_operands = 0 : i64, tpu.core_type = #tpu.core_type<tc>, window_params = [{transform_indices = @transform_0, window_bounds = array<i64: 8, 16>}, {pipeline_mode = #tpu.pipeline_mode<synchronous>, transform_indices = @transform_1, window_bounds = array<i64: 32, 16>}, {pipeline_mode = #tpu.pipeline_mode<synchronous>, transform_indices = @transform_2, window_bounds = array<i64: 32, 1>}, {transform_indices = @transform_3, window_bounds = array<i64: 1, 1>}, {pipeline_mode = #tpu.pipeline_mode<synchronous>, transform_indices = @transform_4, window_bounds = array<i64: 32, 32>}, {pipeline_mode = #tpu.pipeline_mode<synchronous>, transform_indices = @transform_5, window_bounds = array<i64: 32, 1>}, {transform_indices = @transform_6, window_bounds = array<i64: 1, 1>}, {pipeline_mode = #tpu.pipeline_mode<synchronous>, transform_indices = @transform_7, window_bounds = array<i64: 32, 4>}, {pipeline_mode = #tpu.pipeline_mode<synchronous>, transform_indices = @transform_8, window_bounds = array<i64: 1, 4>}, {transform_indices = @transform_9, window_bounds = array<i64: 8, 4>}]} {
    %c0 = arith.constant 0 : index
    %c0_0 = arith.constant 0 : index
    %0 = vector.load %arg1[%c0, %c0_0] : memref<8x16xf32, #tpu.memory_space<vmem>>, vector<8x16xf32>
    %1 = arith.mulf %0, %0 : vector<8x16xf32>
    %cst = arith.constant dense<0.000000e+00> : vector<8xf32>
    %2 = vector.multi_reduction <add>, %1, %cst [1] : vector<8x16xf32> to vector<8xf32>
    %3 = vector.shape_cast %2 : vector<8xf32> to vector<8x1xf32>
    %4 = math.rsqrt %3 : vector<8x1xf32>
    %cst_1 = arith.constant 9.99999995E+11 : f32
    %5 = vector.broadcast %cst_1 : f32 to vector<8x1xf32>
    %6 = arith.minimumf %4, %5 : vector<8x1xf32>
    %7 = vector.broadcast %6 : vector<8x1xf32> to vector<8x16xf32>
    %8 = arith.mulf %0, %7 : vector<8x16xf32>
    %c0_2 = arith.constant 0 : index
    %c0_3 = arith.constant 0 : index
    %9 = memref.load %arg4[%c0_2, %c0_3] : memref<1x1xf32, #tpu.memory_space<smem>>
    %c0_4 = arith.constant 0 : index
    %c0_5 = arith.constant 0 : index
    %10 = memref.load %arg7[%c0_4, %c0_5] : memref<1x1xf32, #tpu.memory_space<smem>>
    %c0_6 = arith.constant 0 : index
    %c0_7 = arith.constant 0 : index
    %11 = vector.load %arg2[%c0_6, %c0_7] : memref<32x16xf32, #tpu.memory_space<vmem>>, vector<32x16xf32>
    %cst_8 = arith.constant dense<0.000000e+00> : vector<32x8xf32>
    %12 = tpu.matmul %11, %8, %cst_8 {dimension_numbers = #tpu.dot_dimension_numbers<[1], [1], [0], [0], [0, 0, 1, 0], [], []>} : vector<32x16xf32>, vector<8x16xf32>, vector<32x8xf32> -> vector<32x8xf32>
    %c0_9 = arith.constant 0 : index
    %c0_10 = arith.constant 0 : index
    %13 = vector.load %arg3[%c0_9, %c0_10] : memref<32x1xf32, #tpu.memory_space<vmem>>, vector<32x1xf32>
    %14 = vector.broadcast %13 : vector<32x1xf32> to vector<32x8xf32>
    %15 = arith.addf %12, %14 : vector<32x8xf32>
    %cst_11 = arith.constant 0.000000e+00 : f32
    %16 = vector.broadcast %cst_11 : f32 to vector<32x8xf32>
    %17 = arith.cmpf oge, %15, %16 : vector<32x8xf32>
    %18 = vector.broadcast %9 : f32 to vector<32x8xf32>
    %19 = arith.mulf %18, %15 : vector<32x8xf32>
    %20 = arith.select %17, %15, %19 : vector<32x8xi1>, vector<32x8xf32>
    %c0_12 = arith.constant 0 : index
    %c0_13 = arith.constant 0 : index
    %21 = vector.load %arg5[%c0_12, %c0_13] : memref<32x32xf32, #tpu.memory_space<vmem>>, vector<32x32xf32>
    %cst_14 = arith.constant dense<0.000000e+00> : vector<32x8xf32>
    %22 = tpu.matmul %21, %20, %cst_14 {dimension_numbers = #tpu.dot_dimension_numbers<[1], [0], [0], [1], [0, 0, 1, 1], [], []>} : vector<32x32xf32>, vector<32x8xf32>, vector<32x8xf32> -> vector<32x8xf32>
    %c0_15 = arith.constant 0 : index
    %c0_16 = arith.constant 0 : index
    %23 = vector.load %arg6[%c0_15, %c0_16] : memref<32x1xf32, #tpu.memory_space<vmem>>, vector<32x1xf32>
    %24 = vector.broadcast %23 : vector<32x1xf32> to vector<32x8xf32>
    %25 = arith.addf %22, %24 : vector<32x8xf32>
    %cst_17 = arith.constant 0.000000e+00 : f32
    %26 = vector.broadcast %cst_17 : f32 to vector<32x8xf32>
    %27 = arith.cmpf oge, %25, %26 : vector<32x8xf32>
    %28 = vector.broadcast %10 : f32 to vector<32x8xf32>
    %29 = arith.mulf %28, %25 : vector<32x8xf32>
    %30 = arith.select %27, %25, %29 : vector<32x8xi1>, vector<32x8xf32>
    %c0_18 = arith.constant 0 : index
    %c0_19 = arith.constant 0 : index
    %31 = vector.load %arg8[%c0_18, %c0_19] : memref<32x4xf32, #tpu.memory_space<vmem>>, vector<32x4xf32>
    %cst_20 = arith.constant dense<0.000000e+00> : vector<8x4xf32>
    %32 = tpu.matmul %30, %31, %cst_20 {dimension_numbers = #tpu.dot_dimension_numbers<[0], [0], [1], [1], [0, 1, 1, 1], [], []>} : vector<32x8xf32>, vector<32x4xf32>, vector<8x4xf32> -> vector<8x4xf32>
    %c0_21 = arith.constant 0 : index
    %c0_22 = arith.constant 0 : index
    %33 = vector.load %arg9[%c0_21, %c0_22] : memref<1x4xf32, #tpu.memory_space<vmem>>, vector<1x4xf32>
    %34 = vector.broadcast %33 : vector<1x4xf32> to vector<8x4xf32>
    %35 = arith.addf %32, %34 : vector<8x4xf32>
    %c0_23 = arith.constant 0 : index
    %c0_24 = arith.constant 0 : index
    %36 = vector.load %arg10[%c0_23, %c0_24] : memref<8x4xf32, #tpu.memory_space<vmem>>, vector<8x4xf32>
    tpu.vector_store %arg10[%c0_23, %c0_24], %35 {strides = array<i32>} : memref<8x4xf32, #tpu.memory_space<vmem>>, vector<8x4xf32>,
    return
  }
  func.func @transform_0(%arg0: i32) -> (i32, i32) {
    %c0_i32 = arith.constant 0 : i32
    %c0_i32_0 = arith.constant 0 : i32
    return %arg0, %c0_i32 : i32, i32
  }
  func.func @transform_1(%arg0: i32) -> (i32, i32) {
    %c0_i32 = arith.constant 0 : i32
    %c0_i32_0 = arith.constant 0 : i32
    %c0_i32_1 = arith.constant 0 : i32
    return %c0_i32, %c0_i32_0 : i32, i32
  }
  func.func @transform_2(%arg0: i32) -> (i32, i32) {
    %c0_i32 = arith.constant 0 : i32
    %c0_i32_0 = arith.constant 0 : i32
    %c0_i32_1 = arith.constant 0 : i32
    return %c0_i32, %c0_i32_0 : i32, i32
  }
  func.func @transform_3(%arg0: i32) -> (i32, i32) {
    %c0_i32 = arith.constant 0 : i32
    %c0_i32_0 = arith.constant 0 : i32
    %c0_i32_1 = arith.constant 0 : i32
    return %c0_i32, %c0_i32_0 : i32, i32
  }
  func.func @transform_4(%arg0: i32) -> (i32, i32) {
    %c0_i32 = arith.constant 0 : i32
    %c0_i32_0 = arith.constant 0 : i32
    %c0_i32_1 = arith.constant 0 : i32
    return %c0_i32, %c0_i32_0 : i32, i32
  }
  func.func @transform_5(%arg0: i32) -> (i32, i32) {
    %c0_i32 = arith.constant 0 : i32
    %c0_i32_0 = arith.constant 0 : i32
    %c0_i32_1 = arith.constant 0 : i32
    return %c0_i32, %c0_i32_0 : i32, i32
  }
  func.func @transform_6(%arg0: i32) -> (i32, i32) {
    %c0_i32 = arith.constant 0 : i32
    %c0_i32_0 = arith.constant 0 : i32
    %c0_i32_1 = arith.constant 0 : i32
    return %c0_i32, %c0_i32_0 : i32, i32
  }
  func.func @transform_7(%arg0: i32) -> (i32, i32) {
    %c0_i32 = arith.constant 0 : i32
    %c0_i32_0 = arith.constant 0 : i32
    %c0_i32_1 = arith.constant 0 : i32
    return %c0_i32, %c0_i32_0 : i32, i32
  }
  func.func @transform_8(%arg0: i32) -> (i32, i32) {
    %c0_i32 = arith.constant 0 : i32
    %c0_i32_0 = arith.constant 0 : i32
    %c0_i32_1 = arith.constant 0 : i32
    return %c0_i32, %c0_i32_0 : i32, i32
  }
  func.func @transform_9(%arg0: i32) -> (i32, i32) {
    %c0_i32 = arith.constant 0 : i32
    %c0_i32_0 = arith.constant 0 : i32
    return %arg0, %c0_i32 : i32, i32
  }
}

</mosaic_0001>

<bundles_post_ra>
// kernel: tpu_custom_call.1
= control target key start
LH: loop header
LB: loop body
LE: loop exit
PB: predicated region body
PF: predicated region fallthrough
CT: control target
= control target key end

     0   :  { %vm36_vm0 = vcmask 130048   ;;  %v516_v4 = vmov 0   ;;  %vm214_vm1 = vcmask 261120   ;;  %v517_v45 = vmov 0.0   ;;  %s656_s0 = inlined_call_operand.vmem [shape: f32[8,16], index: 0, kind: input, shape index: {}]   ;;  %s657_s1 = inlined_call_operand.vmem [shape: f32[32,16], index: 1, kind: input, shape index: {}]   ;;  %s658_s2 = inlined_call_operand.vmem [shape: f32[32,1], index: 2, kind: input, shape index: {}]   ;;  %s659_s5 = inlined_call_operand.vmem [shape: f32[32,1], index: 5, kind: input, shape index: {}]   ;;  %s660_s4 = inlined_call_operand.vmem [shape: f32[32,32], index: 4, kind: input, shape index: {}]   ;;  %s661_s3 = inlined_call_operand.<no memory space> [shape: f32[1,1], index: 3, kind: input, shape index: {}]   ;;  %s662_s7 = inlined_call_operand.vmem [shape: f32[32,4], index: 7, kind: input, shape index: {}]   ;;  %s663_s6 = inlined_call_operand.<no memory space> [shape: f32[1,1], index: 6, kind: input, shape index: {}]   ;;  %s664_s8 = inlined_call_operand.vmem [shape: f32[1,4], index: 8, kind: input, shape index: {}]   ;;  %s665_s9 = inlined_call_operand.vmem [shape: f32[8,4], index: 9, kind: output, shape index: {}]  }
   0x1   :  { %v34_v0 = vld [vmem:[%s656_s0] sm:$0xff]  ;;  %513 = vset.pattern.permute.xlu1 %v516_v4  ;;  %v51_v5 = vld [vmem:[%s658_s2 + $0x10] sm:$0xff]  ;;  %512 = vset.pattern.permute.xlu0 %v516_v4  ;;  %v50_v6 = vld [vmem:[%s658_s2 + $0x8] sm:$0xff]  ;;  %v177_v30 = vstv %s661_s3  ;;  %vm518_vm6 = vmmov 0   ;;  %vm441_vm11 = vcmask 31744  }
   0x2   :  { %v35_v1 = vmul.f32 %v34_v0, %v34_v0  ;;  %v45_v3 = vld [vmem:[%s657_s1] sm:$0xff]  ;;  %65 = vperm.xlu1 %513, %v51_v5   ;;  %v52_v7 = vld [vmem:[%s658_s2 + $0x18] sm:$0xff]  ;;  %v191_v10 = vld [vmem:[%s659_s5 + $0x8] sm:$0xff]  ;;  %v316_v57 = vstv %s663_s6 }
   0x3   :  { %478 = vmatprep.mubr.msk.f32.mxu0 %vm36_vm0, %v45_v3  ;;  %v49_v8 = vld [vmem:[%s658_s2] sm:$0xff]  ;;  %v192_v11 = vld [vmem:[%s659_s5 + $0x10] sm:$0xff]  ;;  %v193_v12 = vld [vmem:[%s659_s5 + $0x18] sm:$0xff] }
   0x4   :  { %v37_v2 = vsel %vm36_vm0, %v35_v1, 0.0  ;;  %v190_v9 = vld [vmem:[%s659_s5] sm:$0xff]  ;;  %v46_v17 = vld [vmem:[%s657_s1 + $0x8] sm:$0xff]  ;;  %v47_v18 = vld [vmem:[%s657_s1 + $0x10] sm:$0xff] }
   0x5   :  { %38 = vadd.xlane.f32.xlu0 %v37_v2  ;;  %v48_v19 = vld [vmem:[%s657_s1 + $0x18] sm:$0xff]  ;;  %v186_v20 = vld [vmem:[%s660_s4] sm:$0xff]  ;;  %v187_v42 = vld [vmem:[%s660_s4 + $0x8] sm:$0xff] }
   0x6   :  { %60 = vperm.xlu1 %513, %v50_v6   ;;  %492 = vmatprep.mubr.msk.f32.mxu1 %vm214_vm1, %v186_v20  ;;  %v188_v43 = vld [vmem:[%s660_s4 + $0x10] sm:$0xff]  ;;  %v189_v44 = vld [vmem:[%s660_s4 + $0x18] sm:$0xff]  ;;  %v326_v48 = vld [vmem:[%s662_s7 + $0x8] sm:$0xff] }
   0x7   :  { %v328_v46 = vld [vmem:[%s662_s7 + $0x18] sm:$0xff]  ;;  %v327_v47 = vld [vmem:[%s662_s7 + $0x10] sm:$0xff]  ;;  %v325_v49 = vld [vmem:[%s662_s7] sm:$0xff] }
   0xa   :  { %55 = vperm.xlu1 %513, %v49_v8   ;;  %v456_v8 = vld [vmem:[%s664_s8] ss:$0 sm:$0xff] }
   0xe   :  { %196 = vperm.xlu1 %513, %v190_v9  }
  0x12   :  { %201 = vperm.xlu1 %513, %v191_v10  }
  0x16   :  { %206 = vperm.xlu1 %513, %v192_v11  }
  0x1a   :  { %211 = vperm.xlu1 %513, %v193_v12  }
  0x1b   :  { %70 = vperm.xlu0 %512, %v52_v7  }
  0x7d   :  { %v66_v21 = vpop.permute.xlu1 %65 }
  0x81   :  { %v61_v22 = vpop.permute.xlu1 %60 }
  0x85   :  { %v56_v29 = vpop.permute.xlu1 %55 }
  0x89   :  { %v197_v50 = vpop.permute.xlu1 %196 }
  0x8d   :  { %v202_v51 = vpop.permute.xlu1 %201 }
  0x8e   :  { %v39_v13 = vpop.xlane.xlu0 %38 }
  0x8f   :  { %514 = vrsqrt.f32 %v39_v13 }
  0x91   :  { %v207_v56 = vpop.permute.xlu1 %206 }
  0x96   :  { %v71_v25 = vpop.permute.xlu0 %70 }
  0x9c   :  { %v515_v14 = vpop.eup %514 }
  0x9d   :  { %v41_v15 = vmin.f32 %v515_v14, 1e+12 }
  0x9f   :  { %v42_v16 = vmul.f32 %v41_v15, %v34_v0  ;;  %v212_v0 = vpop.permute.xlu1 %211 }
  0xa1   :  { %476 = vmatprep.subr.msk.mxu0 %vm36_vm0, %v42_v16 }
  0xa2   :  { %477 = vmatpush3.xpose.msk.msra.mxu0 %vm36_vm0, %v42_v16 }
  0xa3   :  { %498 = vmatprep.subr.mxu0 %v517_v45 }
  0xa5   :  { %479 = vmatmul.mubr.msk.f32.vlgmr.msra.gmra.mxu0 %vm36_vm0, %v46_v17 }
  0xa6   :  { %481 = vmatprep.mubr.msk.f32.mxu0 %vm36_vm0, %v47_v18  ;;  %499 = vmatpush3.msra.mxu0 %v328_v46 }
  0xa7   :  { %500 = vmatprep.subr.mxu0 %v517_v45 }
  0xa8   :  { %501 = vmatpush3.msra.mxu0 %v327_v47 }
  0xa9   :  { %482 = vmatmul.mubr.msk.f32.gmra.mxu0 %vm36_vm0, %v48_v19  ;;  %502 = vmatprep.subr.mxu0 %v517_v45 }
  0xaa   :  { %506 = vmatprep.mubr.msk.f32.mxu0 %vm518_vm6, %v517_v45  ;;  %503 = vmatpush3.msra.mxu0 %v326_v48 }
  0xab   :  { %504 = vmatprep.subr.mxu0 %v517_v45 }
  0xac   :  { %505 = vmatpush3.msra.mxu0 %v325_v49 }
 0x165   :  { %v480_v23 = vpop.f32.mrf.mxu0 }
 0x166   :  { %v160_v27 = vadd.f32 %v480_v23, %v61_v22 }
 0x167   :  { %v154_v24 = vpop.f32.mrf.mxu0 }
 0x168   :  { %v155_v32 = vadd.f32 %v154_v24, %v56_v29  ;;  %v179_v35 = vmul.f32 %v177_v30, %v160_v27  ;;  %vm174_vm4 = vcmp.ge.f32.partialorder %v160_v27, 0.0 }
 0x169   :  { %v483_v26 = vpop.f32.mrf.mxu0 }
 0x16a   :  { %v170_v28 = vadd.f32 %v483_v26, %v71_v25  ;;  %v178_v38 = vmul.f32 %v177_v30, %v155_v32  ;;  %vm173_vm5 = vcmp.ge.f32.partialorder %v155_v32, 0.0  ;;  %v183_v40 = vsel %vm174_vm4, %v160_v27, %v179_v35 }
 0x16b   :  { %v164_v31 = vpop.f32.mrf.mxu0 }
 0x16c   :  { %v165_v33 = vadd.f32 %v164_v31, %v66_v21  ;;  %vm176_vm2 = vcmp.ge.f32.partialorder %v170_v28, 0.0  ;;  %v181_v34 = vmul.f32 %v177_v30, %v170_v28  ;;  %v182_v41 = vsel %vm173_vm5, %v155_v32, %v178_v38 }
 0x16e   :  { %v180_v36 = vmul.f32 %v177_v30, %v165_v33  ;;  %v185_v37 = vsel %vm176_vm2, %v170_v28, %v181_v34  ;;  %vm175_vm3 = vcmp.ge.f32.partialorder %v165_v33, 0.0 }
 0x16f   :  { %484 = vmatprep.subr.mxu1 %v185_v37 }
 0x170   :  { %485 = vmatpush3.msra.mxu1 %v185_v37  ;;  %v184_v39 = vsel %vm175_vm3, %v165_v33, %v180_v36 }
 0x171   :  { %486 = vmatprep.subr.mxu1 %v184_v39 }
 0x172   :  { %487 = vmatpush3.msra.mxu1 %v184_v39 }
 0x173   :  { %488 = vmatprep.subr.mxu1 %v183_v40 }
 0x174   :  { %489 = vmatpush3.msra.mxu1 %v183_v40 }
 0x175   :  { %490 = vmatprep.subr.mxu1 %v182_v41 }
 0x176   :  { %491 = vmatpush3.msra.mxu1 %v182_v41 }
 0x177   :  { %493 = vmatmul.mubr.msk.f32.vlgmr.msra.gmra.mxu1 %vm214_vm1, %v187_v42 }
 0x178   :  { %495 = vmatprep.mubr.msk.f32.mxu1 %vm214_vm1, %v188_v43 }
 0x17b   :  { %496 = vmatmul.mubr.msk.f32.gmra.mxu1 %vm214_vm1, %v189_v44 }
 0x237   :  { %v494_v52 = vpop.f32.mrf.mxu1 }
 0x238   :  { %v299_v54 = vadd.f32 %v494_v52, %v202_v51 }
 0x239   :  { %v293_v53 = vpop.f32.mrf.mxu1 }
 0x23a   :  { %v294_v55 = vadd.f32 %v293_v53, %v197_v50  ;;  %v318_v61 = vmul.f32 %v316_v57, %v299_v54  ;;  %vm313_vm8 = vcmp.ge.f32.partialorder %v299_v54, 0.0 }
 0x23b   :  { %v497_v58 = vpop.f32.mrf.mxu1 }
 0x23c   :  { %v317_v59 = vmul.f32 %v316_v57, %v294_v55  ;;  %vm312_vm7 = vcmp.ge.f32.partialorder %v294_v55, 0.0  ;;  %v309_v1 = vadd.f32 %v497_v58, %v212_v0  ;;  %v322_v3 = vsel %vm313_vm8, %v299_v54, %v318_v61 }
 0x23d   :  { %v303_v60 = vpop.f32.mrf.mxu1 }
 0x23e   :  { %v304_v62 = vadd.f32 %v303_v60, %v207_v56  ;;  %v321_v63 = vsel %vm312_vm7, %v294_v55, %v317_v59  ;;  %v320_v4 = vmul.f32 %v316_v57, %v309_v1  ;;  %vm315_vm10 = vcmp.ge.f32.partialorder %v309_v1, 0.0 }
 0x23f   :  { %336 = vxpose.xlu1.b32.start [1/4] (short) (narrow) %v321_v63, 8 }
 0x240   :  { %v319_v2 = vmul.f32 %v316_v57, %v304_v62  ;;  %vm314_vm9 = vcmp.ge.f32.partialorder %v304_v62, 0.0  ;;  %v324_v6 = vsel %vm315_vm10, %v309_v1, %v320_v4 }
 0x242   :  { %v323_v5 = vsel %vm314_vm9, %v304_v62, %v319_v2 }
 0x243   :  { %337 = vxpose.xlu1.b32.cont [2/4] (short) (narrow) %v322_v3, 8 }
 0x247   :  { %338 = vxpose.xlu1.b32.cont [3/4] (short) (narrow) %v323_v5, 8 }
 0x24b   :  { %339 = vxpose.xlu1.b32.end [4/4] (short) (narrow) %v324_v6, 8 }
 0x2bb   :  { %v352_v7 = vpop.trf.xlu1 }
 0x2bc   :  { %507 = vmatmul.mubr.msk.f32.vlgmr.msra.gmra.mxu0 %vm214_vm1, %v352_v7 }
 0x37c   :  { %v437_v9 = vpop.f32.mrf.mxu0 }
 0x37d   :  { %v438_v10 = vadd.f32 %v456_v8, %v437_v9 }
 0x37e   :  { %v508_v11 = vpop.f32.mrf.mxu0 }
 0x37f   :  { %442 = vst.msk [vmem:[%s665_s9] sm:$0xff] %vm441_vm11, %v438_v10 }

</bundles_post_ra>
